<compile_context>
chip_gen: v7x
topology: tpu7x:2x2x1
jax: 0.10.0
libtpu: 0.0.40
codegen_flags: <defaults>
</compile_context>

<pallas_src>
import jax
import jax.numpy as jnp
from jax.experimental import pallas as pl
from jax.experimental.pallas import tpu as pltpu

_BP = 8      # padded number of box prompts (one sublane tile)
_LANE = 128  # lane tile width


# ----------------------------------------------------------------------------
# Fused decode kernel: per lane-dense tile of the patch grid
#   logits (8, TN) = qw (8, K) @ patches^T (K, TN)   (bf16 MXU, f32 accumulate)
#   logits        += per-box bias scalar (q @ b^T)
#   mask tile      = (logits > 0) as float32          (lane-dense store)
# ----------------------------------------------------------------------------
def _mask_decode_kernel(qw_ref, qb_ref, patches_ref, out_ref):
    logits = jnp.dot(qw_ref[...], patches_ref[...],
                     preferred_element_type=jnp.float32)       # (8, TN)
    logits = logits + qb_ref[...][:, :1]                       # per-box bias
    out_ref[...] = (logits > 0.0).astype(out_ref.dtype)


# ----------------------------------------------------------------------------
# Host-side prep (plain JAX, runs once per call)
# ----------------------------------------------------------------------------
def _patchify_t(image, patch):
    """image (H, W, 3) -> patches^T (K, N) in bf16 (cast fused before transpose)."""
    H, W, Cin = image.shape
    Hp, Wp = H // patch, W // patch
    x = image.astype(jnp.bfloat16).reshape(Hp, patch, Wp, patch, Cin)
    x = jnp.transpose(x, (0, 2, 1, 3, 4)).reshape(Hp * Wp, patch * patch * Cin)
    return x.T                                                 # (K, N)


def _box_queries(boxes, pe, corner, H, W):
    """SAM-style box-prompt encoding: Fourier(corner coords) + corner embeds."""
    q = jnp.zeros((boxes.shape[0], corner.shape[1]), jnp.float32)
    for c in range(2):                      # corner 0 = (x1,y1), 1 = (x2,y2)
        xn = boxes[:, 2 * c: 2 * c + 1] / W
        yn = boxes[:, 2 * c + 1: 2 * c + 2] / H
        f = 2.0 * jnp.pi * (xn * pe[0:1] + yn * pe[1:2])
        q = q + jnp.concatenate([jnp.sin(f), jnp.cos(f)], axis=-1) + corner[c: c + 1]
    return q                                                    # (B, C)


def _choose_tile(n_pad):
    # Prefer large lane-dense tiles (fewer ~0.35 us grid steps on v5e/v6e)
    # while keeping >= 2 "parallel" steps so v7x's two TensorCores share work.
    for t in (2048, 1024, 512, 256, 128):
        if n_pad % t == 0 and n_pad // t >= 2:
            return t
    return n_pad   # tiny fallback: single full block


def _vmem_limit_bytes(tn, k):
    need = 2 * (k * tn * 2)                        # double-buffered bf16 patch tiles
    need += 2 * (_BP * tn * 4)                     # double-buffered f32 mask tiles
    need += 2 * (_BP * k * 2 + _BP * _LANE * 4)    # resident qw / qb operands
    try:
        cap = int(pltpu.get_tpu_info().vmem_capacity_bytes)
    except Exception:
        cap = 64 << 20                             # v7x per-TC VMEM (smallest gen)
    return int(min(max(4 * need, 8 << 20), min(32 << 20, cap // 2)))


# ----------------------------------------------------------------------------
# SAM-box hot path: reassociated patch-embed + box-prompt mask decode
# ----------------------------------------------------------------------------
def sam_box_masks_lowres(image, boxes, params):
    H, W, _ = image.shape
    patch = params["patch"]
    Hp, Wp = H // patch, W // patch
    N = Hp * Wp
    K = patch * patch * 3
    B = boxes.shape[0]
    assert B <= _BP, "this synthetic kernel packs box prompts into one sublane tile"

    # Prompt side (tiny, plain JAX): box-prompt encoding, then the reassociated
    # "query x encoder-weight" projection (B, K) and the per-box bias scalar.
    q = _box_queries(boxes.astype(jnp.float32), params["pe"], params["corner"], H, W)
    qw = q @ params["w_patch"].T                           # (B, K)
    qb = q @ params["b_patch"].T                           # (B, 1)
    qw_p = jnp.zeros((_BP, K), jnp.float32).at[:B].set(qw).astype(jnp.bfloat16)
    qb_p = jnp.zeros((_BP, _LANE), jnp.float32).at[:B, :].set(qb)

    # Image side: bf16 patchify; pad the patch axis to a lane multiple.
    patches_t = _patchify_t(image, patch)                  # (K, N) bf16
    n_pad = pl.cdiv(N, _LANE) * _LANE
    if n_pad != N:
        patches_t = jnp.pad(patches_t, ((0, 0), (0, n_pad - N)))

    TN = _choose_tile(n_pad)
    grid = (n_pad // TN,)

    cost = pl.CostEstimate(
        flops=2 * _BP * K * n_pad + _BP * n_pad,
        transcendentals=0,
        bytes_accessed=(patches_t.size * 2 + qw_p.size * 2
                        + qb_p.size * 4 + _BP * n_pad * 4),
    )

    mask_low = pl.pallas_call(
        _mask_decode_kernel,
        out_shape=jax.ShapeDtypeStruct((_BP, n_pad), jnp.float32),
        grid_spec=pltpu.PrefetchScalarGridSpec(
            num_scalar_prefetch=0,
            grid=grid,
            in_specs=[
                pl.BlockSpec((_BP, K), lambda i: (0, 0)),       # qw (bf16, resident)
                pl.BlockSpec((_BP, _LANE), lambda i: (0, 0)),   # per-box bias (f32)
                pl.BlockSpec((K, TN), lambda i: (0, i)),        # patches^T tile (bf16)
            ],
            out_specs=pl.BlockSpec((_BP, TN), lambda i: (0, i)),
        ),
        compiler_params=pltpu.CompilerParams(
            dimension_semantics=("parallel",),
            vmem_limit_bytes=_vmem_limit_bytes(TN, K),
        ),
        cost_estimate=cost,
    )(qw_p, qb_p, patches_t)

    return mask_low[:B, :N], (Hp, Wp)


# ----------------------------------------------------------------------------
# YOLOSamBox.forward equivalent
# ----------------------------------------------------------------------------
def yolo_sam_box_forward(image, boxes, scores, cls, params):
    """Returns (boxes, masks, scores, cls) like YOLOSamBox.forward."""
    # TODO(synk): YOLO detector (external .pt weights + NMS) has no clean
    # Pallas equivalent; detections (boxes/scores/cls) are taken as inputs.
    B = boxes.shape[0]
    patch = params["patch"]

    mask_low, (Hp, Wp) = sam_box_masks_lowres(image, boxes, params)   # (B, N)
    mask_low = mask_low.reshape(B, 1, Hp, Wp)                         # NCHW

    # TODO(synk): SAM bilinearly upsamples logits before thresholding; here the
    # thresholded low-res mask is nearest-neighbor upsampled (XLA broadcast).
    masks = jnp.repeat(jnp.repeat(mask_low, patch, axis=2), patch, axis=3)
    masks = masks.astype(jnp.float32)

    # TODO(synk): remove_small_regions (connected-component morphology on
    # holes/islands) has no Pallas equivalent and is skipped.
    return boxes, masks, scores, cls


# ----------------------------------------------------------------------------
# Pure-JAX reference of the same synthetic math (mirrors the kernel's bf16 path)
# ----------------------------------------------------------------------------
def _reference_logits(image, boxes, params):
    H, W, _ = image.shape
    patch = params["patch"]
    Hp, Wp = H // patch, W // patch
    img_b = image.astype(jnp.bfloat16).astype(jnp.float32)
    x = img_b.reshape(Hp, patch, Wp, patch, 3)
    patches = jnp.transpose(x, (0, 2, 1, 3, 4)).reshape(Hp * Wp, -1)   # (N, K)

    q = _box_queries(boxes.astype(jnp.float32), params["pe"], params["corner"], H, W)
    qw = (q @ params["w_patch"].T).astype(jnp.bfloat16).astype(jnp.float32)
    qb = q @ params["b_patch"].T
    return qw @ patches.T + qb                                         # (B, N)


# ----------------------------------------------------------------------------
if __name__ == "__main__":
    key = jax.random.PRNGKey(0)
    k_img, k_sc, k_wp, k_bp, k_pe, k_co = jax.random.split(key, 6)

    H = W = 128         # image spatial size
    patch = 4           # -> 32x32 = 1024 patches, K = 48 (bf16-aligned)
    C = 64              # embedding dim
    Cf = C // 2         # Fourier feature dim
    B = 2               # number of detected boxes

    image = jax.random.uniform(k_img, (H, W, 3), jnp.float32)
    boxes = jnp.array([[9.0, 14.0, 70.0, 90.0],
                       [30.0, 40.0, 110.0, 120.0]], dtype=jnp.float32)   # (B, 4)
    scores = jax.random.uniform(k_sc, (B,), jnp.float32)
    cls = jnp.zeros((B,), jnp.int32)

    params = {
        "patch": patch,
        "w_patch": jax.random.normal(k_wp, (patch * patch * 3, C), jnp.float32) * 0.05,
        "b_patch": jax.random.normal(k_bp, (1, C), jnp.float32) * 0.01,
        "pe": jax.random.normal(k_pe, (2, Cf), jnp.float32),
        "corner": jax.random.normal(k_co, (2, C), jnp.float32) * 0.1,
    }

    out_boxes, out_masks, out_scores, out_cls = yolo_sam_box_forward(
        image, boxes, scores, cls, params)
    jax.block_until_ready((out_boxes, out_masks, out_scores, out_cls))

    assert out_masks.shape == (B, 1, H, W) and out_masks.dtype == jnp.float32
    assert out_boxes.shape == (B, 4) and out_scores.shape == (B,)

    # Correctness vs pure-JAX reference; exclude logits within a small margin
    # of the threshold where accumulation-order rounding could flip the sign.
    ref_logits = _reference_logits(image, boxes, params)
    ref_mask = (ref_logits > 0.0).astype(jnp.float32)
    got_low = out_masks[:, 0, ::patch, ::patch].reshape(B, -1)
    confident = jnp.abs(ref_logits) > 1e-2
    assert bool(jnp.all(jnp.where(confident, got_low == ref_mask, True))), \
        "kernel mask disagrees with reference"

    print("KERNEL_OK")
</pallas_src>

<mosaic_0001>
module attributes {stable_mosaic.version = 11 : i64} {
  func.func @_mask_decode_kernel(%arg0: i32, %arg1: memref<8x48xbf16, #tpu.memory_space<vmem>>, %arg2: memref<8x128xf32, #tpu.memory_space<vmem>>, %arg3: memref<48x512xbf16, #tpu.memory_space<vmem>>, %arg4: memref<8x512xf32, #tpu.memory_space<vmem>>) attributes {dimension_semantics = [#tpu.dimension_semantics<parallel>], iteration_bounds = array<i64: 2>, scalar_prefetch = 0 : i64, scratch_operands = 0 : i64, tpu.core_type = #tpu.core_type<tc>, window_params = [{pipeline_mode = #tpu.pipeline_mode<synchronous>, transform_indices = @transform_0, window_bounds = array<i64: 8, 48>}, {pipeline_mode = #tpu.pipeline_mode<synchronous>, transform_indices = @transform_1, window_bounds = array<i64: 8, 128>}, {transform_indices = @transform_2, window_bounds = array<i64: 48, 512>}, {transform_indices = @transform_3, window_bounds = array<i64: 8, 512>}]} {
    %c0 = arith.constant 0 : index
    %c0_0 = arith.constant 0 : index
    %0 = vector.load %arg1[%c0, %c0_0] : memref<8x48xbf16, #tpu.memory_space<vmem>>, vector<8x48xbf16>
    %c0_1 = arith.constant 0 : index
    %c0_2 = arith.constant 0 : index
    %1 = vector.load %arg3[%c0_1, %c0_2] : memref<48x512xbf16, #tpu.memory_space<vmem>>, vector<48x512xbf16>
    %cst = arith.constant dense<0.000000e+00> : vector<8x512xf32>
    %2 = tpu.matmul %0, %1, %cst {dimension_numbers = #tpu.dot_dimension_numbers<[1], [0], [0], [1], [0, 0, 1, 1], [], []>} : vector<8x48xbf16>, vector<48x512xbf16>, vector<8x512xf32> -> vector<8x512xf32>
    %c0_3 = arith.constant 0 : index
    %c0_4 = arith.constant 0 : index
    %3 = vector.load %arg2[%c0_3, %c0_4] : memref<8x128xf32, #tpu.memory_space<vmem>>, vector<8x128xf32>
    %4 = vector.extract_strided_slice %3 {offsets = [0, 0], sizes = [8, 1], strides = [1, 1]} : vector<8x128xf32> to vector<8x1xf32>
    %5 = vector.broadcast %4 : vector<8x1xf32> to vector<8x512xf32>
    %6 = arith.addf %2, %5 : vector<8x512xf32>
    %cst_5 = arith.constant 0.000000e+00 : f32
    %7 = vector.broadcast %cst_5 : f32 to vector<8x512xf32>
    %8 = arith.cmpf ogt, %6, %7 : vector<8x512xf32>
    %9 = arith.extui %8 : vector<8x512xi1> to vector<8x512xi32>
    %10 = arith.sitofp %9 : vector<8x512xi32> to vector<8x512xf32>
    %c0_6 = arith.constant 0 : index
    %c0_7 = arith.constant 0 : index
    %11 = vector.load %arg4[%c0_6, %c0_7] : memref<8x512xf32, #tpu.memory_space<vmem>>, vector<8x512xf32>
    tpu.vector_store %arg4[%c0_6, %c0_7], %10 {strides = array<i32>} : memref<8x512xf32, #tpu.memory_space<vmem>>, vector<8x512xf32>,
    return
  }
  func.func @transform_0(%arg0: i32) -> (i32, i32) {
    %c0_i32 = arith.constant 0 : i32
    %c0_i32_0 = arith.constant 0 : i32
    %c0_i32_1 = arith.constant 0 : i32
    return %c0_i32, %c0_i32_0 : i32, i32
  }
  func.func @transform_1(%arg0: i32) -> (i32, i32) {
    %c0_i32 = arith.constant 0 : i32
    %c0_i32_0 = arith.constant 0 : i32
    %c0_i32_1 = arith.constant 0 : i32
    return %c0_i32, %c0_i32_0 : i32, i32
  }
  func.func @transform_2(%arg0: i32) -> (i32, i32) {
    %c0_i32 = arith.constant 0 : i32
    %c0_i32_0 = arith.constant 0 : i32
    return %c0_i32, %arg0 : i32, i32
  }
  func.func @transform_3(%arg0: i32) -> (i32, i32) {
    %c0_i32 = arith.constant 0 : i32
    %c0_i32_0 = arith.constant 0 : i32
    return %c0_i32, %arg0 : i32, i32
  }
}

</mosaic_0001>

<bundles_post_ra>
// kernel: tpu_custom_call.1
= control target key start
LH: loop header
LB: loop body
LE: loop exit
PB: predicated region body
PF: predicated region fallthrough
CT: control target
= control target key end

     0   :  { %8 = vsyncpa [#allocation3], 0  ;;  %s1055_s0 = inlined_call_operand.hbm [shape: bf16[8,48], index: 0, kind: input, shape index: {}]   ;;  %s1056_s1 = inlined_call_operand.hbm [shape: f32[8,128], index: 1, kind: input, shape index: {}]   ;;  %s1057_s2 = inlined_call_operand.hbm [shape: bf16[48,1024], index: 2, kind: input, shape index: {}]   ;;  %s1058_s3 = inlined_call_operand.hbm [shape: f32[8,1024], index: 3, kind: output, shape index: {}]  }
   0x1   :  { %9 = vsyncpa [#allocation6], 0 }
   0x2   :  { %10 = vsyncpa [#allocation4], 0 }
   0x3   :  { %12 = vsyncpa [#allocation4 + $0x1], 0  ;;  %s820_s12 = smov 0   ;;  %s822_s13 = smov 0  }
   0x4   :  { %s824_s14 = smov 0   ;;  %s826_s15 = smov 0  }
   0x5 LB: > { %s841_s16 = sadd.s32 4294967295, %s789_s15   ;;  %s500_s17 = sadd.s32 4294967294, %s789_s15   ;;  %s789_s15 = sphi %s826_s15, %s1085_s15   ;;  %s785_s14 = sphi %s824_s14, %s1084_s14   ;;  %s781_s13 = sphi %s822_s13, %s1083_s13   ;;  %s777_s12 = sphi %s820_s12, %s1082_s12  }
   0x6   : > { %s845_s18 = sadd.s32 1, %s789_s15   ;;  %s67_s19 = sadd.s32 1, %s785_s14 }
   0x7   : > { %s64_s20 = ssub.s32 %s789_s15, %s845_s18  ;;  %p74_p0 = scmp.ne.s32.totalorder %s785_s14, %s781_s13 }
   0x8   : > { %p65_p1 = scmp.eq.s32.totalorder %s64_s20, 0  ;;  %p75_p2 = scmp.eq.s32.totalorder %s789_s15, 0 }
   0x9   : > { %p80_p3 = scmp.ne.s32.totalorder %s781_s13, %s777_s12  ;;  %p1059_p4 = scmp.eq.s32.totalorder %s841_s16, 0 }
   0xa   : > { %s857_s21 = scalar_select %p65_p1, %s785_s14, %s67_s19  }
   0xb   : > { %p859_p5 = por %p75_p2, %p74_p0  ;;  %p865_p6 = por %p1059_p4, %p80_p3 }
   0xc   : > { %p104_p7 = scmp.eq.s32.totalorder %s841_s16, 1  ;;  %p110_p8 = scmp.eq.s32.totalorder %s500_s17, 1 }
   0xd   : > { %s1065_s23 = scalar_select %p865_p6, 1, 0 }
   0xe   : > { %p501_p9 = scmp.ge.s32.totalorder %s789_s15, 1  ;;  %p117_p10 = scmp.lt.s32.totalorder %s789_s15, 3 }
   0xf   : > { %p872_p11 = por %p104_p7, %p74_p0  ;;  %p876_p12 = por %p110_p8, %p80_p3 }
  0x10   : > { %p880_p13 = pnand %p501_p9, %p117_p10  ;;  %s791_s27 = smov [#allocation2]  }
  0x11   : > { %s1066_s24 = scalar_select %p872_p11, 1, 0 }
  0x12   : > { %s1067_s25 = scalar_select %p876_p12, 1, 0 }
  0x13   : > { %s1068_s26 = scalar_select %p880_p13, 1, 0 }
  0x14   : > { %p550_p2 = pneg %p880_p13  ;;  %s130_s28 = sshll.u32 %s791_s27, 4  ;;  %s131_s28 = int_to_ptr.vmem [resolvable:$true] %s130_s28 }
  0x15   : > { %p567_p4 = scmp.lt.s32.totalorder %s789_s15, 2  ;;  %p1069_p0 = scmp.eq.s32.totalorder %s841_s16, 0 }
  0x16   : > { %s792_s4 = smov [#allocation5]   ;;  %s629_s8 = scalar_lea.hbm %s1055_s0, 64 }
  0x17   : > { %p890_p7 = pnand %p550_p2, %p1069_p0  ;;  %p896_p3 = pnand %p567_p4, %p859_p5 }
  0x18   : > { %s141_s5 = sshll.u32 %s792_s4, 4  ;;  %p630_p8 = scmp.ne.s32.totalorder %s1055_s0, %s629_s8  ;;  %s900_s5 = int_to_ptr.vmem [resolvable:$true] %s141_s5 }
  0x19   : > { %s1071_s30 = scalar_select %p896_p3, 1, 0 }
  0x1a   : > { %p631_p9 = pneg %p890_p7  ;;  %p636_p10 = scmp.lt.u32.totalorder %s629_s8, %s1055_s0 }
  0x1c   : > { %p632_p4 = pnand %p631_p9, %p630_p8 }
  0x1e   : > { %p633_p5 = pneg %p632_p4 }
  0x20   : > { %p638_p2 = pnand %p636_p10, %p633_p5 }
  0x22   : > { %641 = shalt.err (!%p638_p2)
}
  0x23   : > { %s642_s19 = scalar_lea.vmem %s131_s28, 64  ;;  %p650_p11 = scmp.lt.s32.totalorder %s131_s28, %s131_s28 }
  0x24   : > { %p643_p0 = scmp.ne.s32.totalorder %s131_s28, %s642_s19  ;;  %p651_p6 = scmp.lt.s32.totalorder %s642_s19, %s642_s19 }
  0x26   : > { %p645_p1 = pnand %p643_p0, %p631_p9  ;;  %p652_p13 = por %p651_p6, %p650_p11 }
  0x28   : > { %p646_p12 = pneg %p645_p1 }
  0x2a   : > { %p653_p3 = pnand %p652_p13, %p646_p12 }
  0x2c   : > { %656 = shalt.err (!%p653_p3)
}
  0x2d   : > { %553 = dma.hbm_to_vmem [thread:$0]  (!%p890_p7), %s1055_s0, 64, %s131_s28, [#allocation3]  }
  0x2e   : > { %s152_s27 = sand.u32 1, %s789_s15   ;;  %s657_s7 = scalar_lea.hbm %s1056_s1, 128 }
  0x2f   : > { %p658_p1 = scmp.ne.s32.totalorder %s1056_s1, %s657_s7  ;;  %p664_p12 = scmp.lt.u32.totalorder %s657_s7, %s1056_s1 }
  0x31   : > { %p660_p6 = pnand %p658_p1, %p631_p9 }
  0x33   : > { %p661_p11 = pneg %p660_p6 }
  0x35   : > { %p666_p13 = pnand %p664_p12, %p661_p11 }
  0x37   : > { %669 = shalt.err (!%p666_p13)
}
  0x38   : > { %s670_s28 = scalar_lea.vmem %s900_s5, 128  ;;  %p678_p5 = scmp.lt.s32.totalorder %s900_s5, %s900_s5 }
  0x39   : > { %p671_p3 = scmp.ne.s32.totalorder %s900_s5, %s670_s28  ;;  %p679_p10 = scmp.lt.s32.totalorder %s670_s28, %s670_s28 }
  0x3b   : > { %p673_p8 = pnand %p671_p3, %p631_p9  ;;  %p680_p2 = por %p679_p10, %p678_p5 }
  0x3d   : > { %p674_p4 = pneg %p673_p8 }
  0x3f   : > { %p681_p0 = pnand %p680_p2, %p674_p4 }
  0x41   : > { %684 = shalt.err (!%p681_p0)
}
  0x42   : > { %556 = dma.hbm_to_vmem [thread:$0]  (!%p890_p7), %s1056_s1, 128, %s900_s5, [#allocation6]  }
  0x43   : > { %s154_s20 = sand.u32 1, %s785_s14   ;;  %s534_s4 = sshll.u32 %s789_s15, 8 }
  0x44   : > { %s536_s22 = smul.u32 96, %s154_s20  ;;  %s955_s8 = scalar_lea.hbm %s1057_s2, %s534_s4 }
  0x45   : > { %s959_s10 = scalar_lea.sflag [#allocation3], %s152_s27  ;;  %s685_s11 = scalar_lea.hbm %s955_s8, 1536 }
  0x46   : > { %s156_s29 = scalar_lea.vmem [#allocation7], %s536_s22  ;;  %p686_p7 = scmp.ne.s32.totalorder %s955_s8, %s685_s11 }
  0x47   : > { %s163_s9 = sshll.u32 %s156_s29, 4  ;;  %p1072_p9 = scmp.ne.s32.totalorder %s1071_s30, 0  ;;  %s957_s9 = int_to_ptr.vmem [resolvable:$true] %s163_s9 }
  0x48   : > { %s690_s17 = scalar_lea.hbm %s1057_s2, 3072  ;;  %p691_p12 = scmp.lt.u32.totalorder %s955_s8, %s1057_s2 }
  0x49   : > { %p687_p1 = pneg %p1072_p9  ;;  %p692_p13 = scmp.lt.u32.totalorder %s690_s17, %s685_s11 }
  0x4a   : > { %p694_p8 = scmp.lt.u32.totalorder %s685_s11, %s955_s8 }
  0x4b   : > { %p688_p6 = pnand %p687_p1, %p686_p7  ;;  %p693_p3 = por %p692_p13, %p691_p12 }
  0x4d   : > { %p689_p11 = pneg %p688_p6  ;;  %p695_p4 = por %p694_p8, %p693_p3 }
  0x4f   : > { %p696_p5 = pnand %p695_p4, %p689_p11 }
  0x51   : > { %699 = shalt.err (!%p696_p5)
}
  0x52   : > { %s700_s27 = scalar_lea.vmem %s957_s9, 1536  ;;  %s793_s22 = smov [#allocation7]  }
  0x53   : > { %p701_p10 = scmp.ne.s32.totalorder %s957_s9, %s700_s27  ;;  %s705_s4 = sshll.u32 %s793_s22, 4  ;;  %s706_s4 = int_to_ptr.vmem [resolvable:$false] %s705_s4 }
  0x54   : > { %s707_s6 = scalar_lea.vmem %s706_s4, 3072  ;;  %p708_p7 = scmp.lt.s32.totalorder %s957_s9, %s706_s4 }
  0x55   : > { %p703_p2 = pnand %p701_p10, %p687_p1  ;;  %p709_p6 = scmp.lt.s32.totalorder %s707_s6, %s700_s27 }
  0x57   : > { %p704_p0 = pneg %p703_p2  ;;  %p710_p12 = por %p709_p6, %p708_p7 }
  0x59   : > { %p711_p13 = pnand %p710_p12, %p704_p0 }
  0x5b   : > { %714 = shalt.err (!%p711_p13)
}
  0x5c   : > { %s794_s7 = smov 512   ;;  %s795_s29 = smov 256  }
  0x5d   : > { %s796_s11 = smov 16   ;;  %p1073_p1 = scmp.ne.s32.totalorder %s1068_s26, 0 }
  0x5e   : > { %560 = dma.hbm_to_vmem [thread:$0]  (!%p1072_p9), %s955_s8, 1536, %s957_s9, %s959_s10, %s794_s7, %s795_s29, %s796_s11  }
  0x5f   : > { %175 = sbr.rel (%p1073_p1) target bundleno = 358 (0x166), region = 32  ;;  %p1074_p11 = scmp.eq.s32.totalorder (!%p1073_p1), %s841_s16, 0 }
  0x66   : > { %760 = dma.done.wait (%p1074_p11), [#allocation3], 64   ;;  %p1075_p3 = pmov %p1074_p11 }
  0x68   : > { %762 = vsyncadd (%p1075_p3), [#allocation3], 4294967232  ;;  %p1076_p8 = pmov %p1075_p3 }
  0x69   : > { %p1077_p4 = pmov %p1075_p3 }
  0x6a   : > { %764 = dma.done.wait (%p1076_p8), [#allocation6], 128  }
  0x6b   : > { %766 = vsyncadd (%p1077_p4), [#allocation6], 4294967168  ;;  %s185_s30 = sand.u32 1, %s841_s16   ;;  %s999_s8 = sand.u32 1, %s781_s13  }
  0x6c   : > { %s537_s26 = smul.u32 96, %s999_s8  ;;  %s186_s9 = scalar_lea.sflag [#allocation3], %s185_s30 }
  0x6d   : > { %p1078_p9 = scmp.ne.s32.totalorder %s1065_s23, 0 }
  0x6e   : > { %s189_s10 = scalar_lea.vmem [#allocation7], %s537_s26 }
  0x6f   : > { %768 = dma.done.wait (%p1078_p9), %s186_s9, 1536  }
  0x70   : > { %770 = vsyncadd (%p1078_p9), %s186_s9, 4294965760  ;;  %v797_v0 = vmov 0   ;;  %v611_v1 = vld [vmem:[%s189_s10 + $0x4] ss:$16 sps:$4 sm:$0xff]   ;;  %v613_v2 = vld [vmem:[%s189_s10 + $0xc] ss:$16 sps:$4 sm:$0xff]  }
  0x71   : > { %330 = vmatprep.mubr.bf16.mxu0 %v797_v0  ;;  %371 = vmatprep.mubr.bf16.mxu1 %v797_v0  ;;  %v615_v3 = vld [vmem:[%s189_s10] ss:$16 sps:$4 sm:$0xff]   ;;  %v616_v4 = vld [vmem:[%s189_s10 + $0x8] ss:$16 sps:$4 sm:$0xff]   ;;  %v617_v5 = vld [vmem:[%s189_s10 + $0x24] ss:$16 sps:$4 sm:$0xff]  }
  0x72   : > { %610 = vset.pattern.permute.xlu0 %v797_v0  ;;  %298 = vmatprep.subr.bf16.mxu0 %v611_v1  ;;  %v619_v6 = vld [vmem:[%s189_s10 + $0x2c] ss:$16 sps:$4 sm:$0xff]   ;;  %v621_v7 = vld [vmem:[%s189_s10 + $0x20] ss:$16 sps:$4 sm:$0xff]   ;;  %v622_v8 = vld [vmem:[%s189_s10 + $0x28] ss:$16 sps:$4 sm:$0xff]  }
  0x73   : > { %339 = vmatprep.subr.bf16.mxu1 %v613_v2  ;;  %299 = vmatpush1.bf16.msra.mxu0 %v615_v3  ;;  %v623_v9 = vld [vmem:[%s189_s10 + $0x44] ss:$16 sps:$4 sm:$0xff]   ;;  %v625_v10 = vld [vmem:[%s189_s10 + $0x4c] ss:$16 sps:$4 sm:$0xff]   ;;  %v627_v11 = vld [vmem:[%s189_s10 + $0x40] ss:$16 sps:$4 sm:$0xff]  }
  0x74   : > { %340 = vmatpush1.bf16.msra.mxu1 %v616_v4  ;;  %300 = vmatprep.subr.bf16.mxu0 %v617_v5  ;;  %v628_v12 = vld [vmem:[%s189_s10 + $0x48] ss:$16 sps:$4 sm:$0xff]   ;;  %v215_v14 = vld [vmem:[#allocation2] sm:$0xf]  ;;  %vm294_vm0 = vcmask 392192   ;;  %s510_s23 = sshll.u32 %s999_s8, 5 }
  0x75   : > { %341 = vmatprep.subr.bf16.mxu1 %v619_v6  ;;  %v228_v13 = vld [vmem:[#allocation5] sm:$0xff]  ;;  %s535_s5 = sshll.u32 %s841_s16, 9  ;;  %s211_s28 = scalar_lea.vmem [#allocation8], %s510_s23  ;;  %v798_v28 = vmov 0.0  }
  0x76   : > { %231 = vperm.xlu0 %610, %v228_v13   ;;  %s411_s17 = sshll.u32 %s211_s28, 4  ;;  %s1011_s16 = scalar_lea.hbm %s1058_s3, %s535_s5  ;;  %s1013_s17 = int_to_ptr.vmem [resolvable:$true] %s411_s17 }
  0x77   : > { %301 = vmatpush1.bf16.msra.mxu0 %v621_v7  ;;  %s397_s27 = scalar_lea.sflag [#allocation4], %s999_s8  ;;  %s715_s22 = scalar_lea.vmem %s1013_s17, 512 }
  0x78   : > { %342 = vmatpush1.bf16.msra.mxu1 %v622_v8  ;;  %302 = vmatprep.subr.bf16.mxu0 %v623_v9  ;;  %p716_p5 = scmp.ne.s32.totalorder %s1013_s17, %s715_s22  ;;  %p1079_p10 = scmp.ne.s32.totalorder %s1066_s24, 0 }
  0x79   : > { %343 = vmatprep.subr.bf16.mxu1 %v625_v10  ;;  %s799_s4 = smov [#allocation8]  }
  0x7a   : > { %p717_p2 = pnand %p716_p5, %p1079_p10  ;;  %s719_s6 = sshll.u32 %s799_s4, 4  ;;  %s720_s6 = int_to_ptr.vmem [resolvable:$false] %s719_s6 }
  0x7b   : > { %303 = vmatpush1.bf16.msra.mxu0 %v627_v11  ;;  %s721_s7 = scalar_lea.vmem %s720_s6, 1024  ;;  %p722_p7 = scmp.lt.s32.totalorder %s1013_s17, %s720_s6 }
  0x7c   : > { %344 = vmatpush1.bf16.msra.mxu1 %v628_v12  ;;  %p718_p0 = pneg %p717_p2  ;;  %p723_p6 = scmp.lt.s32.totalorder %s721_s7, %s715_s22 }
  0x7e   : > { %523 = vmatmul.mubr.msk.bf16.vlgmr.msra.gmra.mrb[0].mxu0 %vm294_vm0, %v215_v14  ;;  %p724_p12 = por %p723_p6, %p722_p7 }
  0x7f   : > { %524 = vmatmul.mubr.msk.bf16.vlgmr.msra.gmra.mrb[0].mxu1 %vm294_vm0, %v215_v14 }
  0x80   : > { %p725_p13 = pnand %p724_p12, %p718_p0 }
  0xf5   : > { %v232_v15 = vpop.permute.xlu0 %231 }
 0x151   : > { %v332_v16 = vpop.f32.mrb[0].mxu0 }
 0x152   : > { %v373_v17 = vpop.f32.mrb[0].mxu1  ;;  %v333_v18 = vadd.f32 %v332_v16, %v232_v15  ;;  %v334_v20 = vpop.f32.mrb[1].mxu0 }
 0x153   : > { %v374_v19 = vadd.f32 %v373_v17, %v232_v15  ;;  %v375_v21 = vpop.f32.mrb[1].mxu1  ;;  %v335_v22 = vadd.f32 %v334_v20, %v232_v15  ;;  %v336_v24 = vpop.f32.mrb[2].mxu0 }
 0x154   : > { %v376_v23 = vadd.f32 %v375_v21, %v232_v15  ;;  %v377_v25 = vpop.f32.mrb[2].mxu1  ;;  %vm380_vm1 = vcmp.gt.f32.partialorder %v333_v18, 0.0  ;;  %v337_v26 = vpop.f32.mrb[3].mxu0 }
 0x155   : > { %vm382_vm2 = vcmp.gt.f32.partialorder %v374_v19, 0.0  ;;  %v378_v27 = vpop.f32.mrb[3].mxu1  ;;  %v525_v29 = vsel %vm380_vm1, 1.0, %v798_v28  ;;  %vm381_vm3 = vcmp.gt.f32.partialorder %v335_v22, 0.0 }
 0x156   : > { %v527_v30 = vsel %vm382_vm2, 1.0, %v798_v28  ;;  %vm383_vm4 = vcmp.gt.f32.partialorder %v376_v23, 0.0  ;;  %392 = vst [vmem:[%s211_s28] sm:$0xff] %v525_v29  ;;  %v526_v31 = vsel %vm381_vm3, 1.0, %v798_v28 }
 0x157   : > { %394 = vst [vmem:[%s211_s28 + $0x10] sm:$0xff] %v527_v30  ;;  %v528_v32 = vsel %vm383_vm4, 1.0, %v798_v28  ;;  %393 = vst [vmem:[%s211_s28 + $0x8] sm:$0xff] %v526_v31 }
 0x158   : > { %395 = vst [vmem:[%s211_s28 + $0x18] sm:$0xff] %v528_v32 }
 0x159   : > { %728 = shalt.err (!%p725_p13)
}
 0x15a   : > { %s729_s29 = scalar_lea.hbm %s1011_s16, 512  ;;  %s733_s8 = scalar_lea.hbm %s1058_s3, 1024 }
 0x15b   : > { %p730_p1 = scmp.ne.s32.totalorder %s1011_s16, %s729_s29  ;;  %p734_p8 = scmp.lt.u32.totalorder %s1011_s16, %s1058_s3 }
 0x15c   : > { %p735_p4 = scmp.lt.u32.totalorder %s733_s8, %s729_s29  ;;  %p737_p5 = scmp.lt.u32.totalorder %s729_s29, %s1011_s16 }
 0x15d   : > { %p731_p11 = pnand %p730_p1, %p1079_p10 }
 0x15e   : > { %p736_p9 = por %p735_p4, %p734_p8 }
 0x15f   : > { %p732_p3 = pneg %p731_p11 }
 0x160   : > { %p738_p2 = por %p737_p5, %p736_p9 }
 0x162   : > { %p739_p0 = pnand %p738_p2, %p732_p3 }
 0x164   : > { %742 = shalt.err (!%p739_p0)
}
 0x165   : > { %548 = dma.vmem_to_hbm [thread:$0]  (%p1079_p10), %s1013_s17, 512, %s1011_s16, %s397_s27  }
 0x166 PF: > { %s423_s10 = sand.u32 1, %s777_s12   ;;  %p1080_p7 = scmp.ne.s32.totalorder %s1067_s25, 0 }
 0x167   : > { %p1081_p6 = scmp.ge.s32.totalorder %s789_s15, 2  ;;  %s424_s23 = scalar_lea.sflag [#allocation4], %s423_s10 }
 0x169   : > { %p562_p12 = pnand %p1081_p6, %p1080_p7 }
 0x16b   : > { %772 = dma.done.wait (!%p562_p12), %s424_s23, 512  }
 0x16c   : > { %774 = vsyncadd (!%p562_p12), %s424_s23, 4294966784  ;;  %p15_p13 = scmp.ge.s32.totalorder %s845_s18, 4   ;;  %s1082_s12 = smov %s781_s13 }
 0x16d   : > { %s1083_s13 = smov %s785_s14  ;;  %s1084_s14 = smov %s857_s21 }
 0x16e   : > { %s1085_s15 = smov %s845_s18  ;;  %17 = sbr.rel (!%p15_p13) target bundleno = 5 (0x5), region = 84 }
 0x175   :  { %429 = vsyncpa [#allocation3], 1 }
 0x176   :  { %431 = vsyncpa [#allocation3 + $0x1], 1 }
 0x177   :  { %432 = vsyncpa [#allocation6], 1 }
 0x178   :  { %433 = vsyncpa [#allocation4], 1 }
 0x179   :  { %435 = vsyncpa [#allocation4 + $0x1], 1 }

</bundles_post_ra>
